<compile_context>
chip_gen: v6e
topology: v6e:2x2x1
jax: 0.10.0
libtpu: 0.0.40
codegen_flags: <defaults>
</compile_context>

<pallas_src>
import jax
import jax.numpy as jnp
from jax import lax
from jax.experimental import pallas as pl
from jax.experimental.pallas import tpu as pltpu

INPUT_SIZE = 1
HIDDEN_SIZE = 10
NUM_LAYERS = 1      # single layer
OUTPUT_SIZE = 1
DROPOUT = 0         # dropout=0 -> no-op in forward

GP = 32             # per-gate lane stride inside the packed gate vector
GW = 4 * GP         # total packed gate width = 128 lanes = one vreg


def lstm_fc_kernel(x_ref, wih_ref, whh_ref, b_ref, wfc_ref, bfc_ref, out_ref):
    """LSTM unroll + last-step ReLU + Linear, all in VMEM.

    x_ref   : (S, TB, 1)   time-major input tile
    wih_ref : (1, GW)      input->gates weight, gate k at lanes [32k, 32k+10), rest 0
    whh_ref : (GP, GW)     hidden->gates weight, rows [10..32) and padded cols 0
    b_ref   : (1, GW)      bias_ih + bias_hh, packed/padded like wih
    wfc_ref : (1, GP)      fc weight row, lanes [10..32) zero
    bfc_ref : (1, 1)       fc bias
    out_ref : (TB, 1)
    """
    S, TB, _ = x_ref.shape

    wih = wih_ref[...]            # (1, GW)
    whh = whh_ref[...]            # (GP, GW)
    bias = b_ref[...]             # (1, GW)

    # Hoisted, time-vectorized input projection (+ folded bias): input_size==1
    # makes this a pure VPU broadcast multiply-add over all S*TB rows at once.
    xg_all = x_ref[...] * wih + bias          # (S, TB, GW)

    h = jnp.zeros((TB, GP), jnp.float32)
    c = jnp.zeros((TB, GP), jnp.float32)

    # Fully-unrolled recurrence (S is small & static). Only h @ W_hh plus the
    # two gate activations stay on the serial critical path.
    # A/B alternative: replace the MXU dot with 10 VPU broadcast-MACs
    # (sum_k h[:, k:k+1] * whh[k:k+1, :]) — keep whichever shows lower
    # per-step spacing in a bundle dump.
    for t in range(S):
        gates = xg_all[t] + jnp.dot(h, whh,
                                    preferred_element_type=jnp.float32)  # (TB, GW)

        sig = jax.nn.sigmoid(gates)          # one EUP pass (covers i/f/o lanes)
        th = jnp.tanh(gates)                 # one EUP pass (covers g lanes)

        i_g = sig[:, 0 * GP:1 * GP]          # static lane slices of the packed vreg
        f_g = sig[:, 1 * GP:2 * GP]
        g_g = th[:, 2 * GP:3 * GP]
        o_g = sig[:, 3 * GP:4 * GP]

        c = f_g * c + i_g * g_g              # padded lanes stay exactly 0 (see header)
        h = o_g * jnp.tanh(c)

    # fc = Sequential(ReLU, Linear(H -> 1)) on the last hidden state:
    # VPU multiply + lane reduce (no MXU push/pop on the tail).
    act = jnp.maximum(h, 0.0)                                   # (TB, GP)
    out_ref[...] = (
        jnp.sum(act * wfc_ref[...], axis=-1, keepdims=True) + bfc_ref[...]
    )


def prepare_params(params):
    """One-time weight prep: transpose, pack gates into 128 lanes, fold biases."""
    H, O = HIDDEN_SIZE, OUTPUT_SIZE

    wih_t = params["w_ih"].T.astype(jnp.float32)                  # (1, 4H)
    whh_t = params["w_hh"].T.astype(jnp.float32)                  # (H, 4H)
    b = (params["b_ih"] + params["b_hh"]).reshape(1, 4 * H).astype(jnp.float32)

    def pack_gates(m):  # (rows, 4H) -> (rows, GW): gate k -> lanes [k*GP, k*GP+H)
        out = jnp.zeros((m.shape[0], GW), jnp.float32)
        for k in range(4):
            out = out.at[:, k * GP:k * GP + H].set(m[:, k * H:(k + 1) * H])
        return out

    wih_p = pack_gates(wih_t)                                      # (1, GW)
    whh_p = jnp.zeros((GP, GW), jnp.float32).at[:H, :].set(pack_gates(whh_t))
    b_p = pack_gates(b)                                            # (1, GW)

    wfc_p = jnp.zeros((1, GP), jnp.float32).at[:, :H].set(
        params["w_fc"].astype(jnp.float32))                        # (1, GP), O == 1
    bfc_p = params["b_fc"].reshape(1, O).astype(jnp.float32)       # (1, 1)

    return {"wih": wih_p, "whh": whh_p, "b": b_p, "wfc": wfc_p, "bfc": bfc_p}


def apple_lstm_forward(x, kparams):
    """x: (B, S, 1) batch-first like the PyTorch module. Returns (B, OUTPUT_SIZE)."""
    B, S, I = x.shape
    # Time-major so each step reads a contiguous (TB, I) tile. Tiny here; for
    # serving-scale B*S either feed time-major directly or pass (B, S) and
    # slice per-step lanes in-kernel to avoid the extra HBM round trip.
    x_tm = jnp.transpose(x, (1, 0, 2)).astype(jnp.float32)         # (S, B, I)

    # Batch tile: whole batch here. For larger batches: TB must divide B and
    # be a multiple of 8 (f32 sublane rule); give the parallel axis >= 2 tiles
    # so v7x's two TensorCores both get work, and keep xg staging
    # (S*TB*GW*4 B per tile) inside the 32 MiB scoped / 64 MiB physical VMEM.
    TB = B
    assert B % TB == 0 and (TB == B or TB % 8 == 0)
    grid = (pl.cdiv(B, TB),)

    return pl.pallas_call(
        lstm_fc_kernel,
        out_shape=jax.ShapeDtypeStruct((B, OUTPUT_SIZE), jnp.float32),
        grid_spec=pltpu.PrefetchScalarGridSpec(
            num_scalar_prefetch=0,
            grid=grid,
            in_specs=[
                pl.BlockSpec((S, TB, I), lambda b: (0, b, 0)),        # x (time-major)
                pl.BlockSpec((1, GW), lambda b: (0, 0)),              # W_ih (packed)
                pl.BlockSpec((GP, GW), lambda b: (0, 0)),             # W_hh (packed)
                pl.BlockSpec((1, GW), lambda b: (0, 0)),              # bias (packed)
                pl.BlockSpec((1, GP), lambda b: (0, 0)),              # fc weight
                pl.BlockSpec((1, OUTPUT_SIZE), lambda b: (0, 0)),     # fc bias
            ],
            out_specs=pl.BlockSpec((TB, OUTPUT_SIZE), lambda b: (b, 0)),
        ),
        compiler_params=pltpu.CompilerParams(
            dimension_semantics=("parallel",)),
    )(x_tm, kparams["wih"], kparams["whh"], kparams["b"], kparams["wfc"], kparams["bfc"])


def init_params(key):
    """Deterministic init mimicking PyTorch's U(-1/sqrt(H), 1/sqrt(H))."""
    H, I, O = HIDDEN_SIZE, INPUT_SIZE, OUTPUT_SIZE
    k = 1.0 / jnp.sqrt(jnp.float32(H))
    keys = jax.random.split(key, 6)
    u = lambda kk, shape: jax.random.uniform(kk, shape, jnp.float32, -k, k)
    return {
        "w_ih": u(keys[0], (4 * H, I)),   # PyTorch weight_ih_l0
        "w_hh": u(keys[1], (4 * H, H)),   # PyTorch weight_hh_l0
        "b_ih": u(keys[2], (4 * H,)),
        "b_hh": u(keys[3], (4 * H,)),
        "w_fc": u(keys[4], (O, H)),       # PyTorch Linear.weight
        "b_fc": u(keys[5], (O,)),
    }


def reference_forward(x, params):
    """Pure-JAX reference of the PyTorch forward, for correctness check."""
    H = HIDDEN_SIZE
    B = x.shape[0]
    wih_t = params["w_ih"].T
    whh_t = params["w_hh"].T
    b = params["b_ih"] + params["b_hh"]

    def step(carry, x_t):
        h, c = carry
        gates = x_t @ wih_t + h @ whh_t + b
        i_g = jax.nn.sigmoid(gates[:, 0 * H:1 * H])
        f_g = jax.nn.sigmoid(gates[:, 1 * H:2 * H])
        g_g = jnp.tanh(gates[:, 2 * H:3 * H])
        o_g = jax.nn.sigmoid(gates[:, 3 * H:4 * H])
        c = f_g * c + i_g * g_g
        h = o_g * jnp.tanh(c)
        return (h, c), None

    h0 = jnp.zeros((B, H), jnp.float32)
    c0 = jnp.zeros((B, H), jnp.float32)
    (h_last, _), _ = lax.scan(step, (h0, c0), jnp.transpose(x, (1, 0, 2)))
    return jnp.maximum(h_last, 0.0) @ params["w_fc"].T + params["b_fc"]


if __name__ == "__main__":
    key = jax.random.PRNGKey(0)
    pkey, xkey = jax.random.split(key)
    params = init_params(pkey)
    kparams = prepare_params(params)   # one-time weight transpose/pack/fold

    batch, seq = 2, 8
    x = jax.random.normal(xkey, (batch, seq, INPUT_SIZE), jnp.float32)

    out = jax.block_until_ready(apple_lstm_forward(x, kparams))

    ref = reference_forward(x, params)
    assert out.shape == (batch, OUTPUT_SIZE)
    assert jnp.max(jnp.abs(out - ref)) < 1e-5, "mismatch vs pure-JAX reference"

    print("KERNEL_OK")
</pallas_src>

<mosaic_0001>
module attributes {stable_mosaic.version = 11 : i64} {
  func.func @lstm_fc_kernel(%arg0: i32, %arg1: memref<8x2x1xf32, #tpu.memory_space<vmem>>, %arg2: memref<1x128xf32, #tpu.memory_space<vmem>>, %arg3: memref<32x128xf32, #tpu.memory_space<vmem>>, %arg4: memref<1x128xf32, #tpu.memory_space<vmem>>, %arg5: memref<1x32xf32, #tpu.memory_space<vmem>>, %arg6: memref<1x1xf32, #tpu.memory_space<vmem>>, %arg7: memref<2x1xf32, #tpu.memory_space<vmem>>) attributes {dimension_semantics = [#tpu.dimension_semantics<parallel>], iteration_bounds = array<i64: 1>, scalar_prefetch = 0 : i64, scratch_operands = 0 : i64, tpu.core_type = #tpu.core_type<tc>, window_params = [{transform_indices = @transform_0, window_bounds = array<i64: 8, 2, 1>}, {pipeline_mode = #tpu.pipeline_mode<synchronous>, transform_indices = @transform_1, window_bounds = array<i64: 1, 128>}, {pipeline_mode = #tpu.pipeline_mode<synchronous>, transform_indices = @transform_2, window_bounds = array<i64: 32, 128>}, {pipeline_mode = #tpu.pipeline_mode<synchronous>, transform_indices = @transform_3, window_bounds = array<i64: 1, 128>}, {pipeline_mode = #tpu.pipeline_mode<synchronous>, transform_indices = @transform_4, window_bounds = array<i64: 1, 32>}, {pipeline_mode = #tpu.pipeline_mode<synchronous>, transform_indices = @transform_5, window_bounds = array<i64: 1, 1>}, {transform_indices = @transform_6, window_bounds = array<i64: 2, 1>}]} {
    %c0 = arith.constant 0 : index
    %c0_0 = arith.constant 0 : index
    %0 = vector.load %arg2[%c0, %c0_0] : memref<1x128xf32, #tpu.memory_space<vmem>>, vector<1x128xf32>
    %c0_1 = arith.constant 0 : index
    %c0_2 = arith.constant 0 : index
    %1 = vector.load %arg3[%c0_1, %c0_2] : memref<32x128xf32, #tpu.memory_space<vmem>>, vector<32x128xf32>
    %c0_3 = arith.constant 0 : index
    %c0_4 = arith.constant 0 : index
    %2 = vector.load %arg4[%c0_3, %c0_4] : memref<1x128xf32, #tpu.memory_space<vmem>>, vector<1x128xf32>
    %c0_5 = arith.constant 0 : index
    %c0_6 = arith.constant 0 : index
    %c0_7 = arith.constant 0 : index
    %3 = vector.load %arg1[%c0_5, %c0_6, %c0_7] : memref<8x2x1xf32, #tpu.memory_space<vmem>>, vector<8x2x1xf32>
    %4 = vector.shape_cast %0 : vector<1x128xf32> to vector<1x1x128xf32>
    %5 = vector.broadcast %3 : vector<8x2x1xf32> to vector<8x2x128xf32>
    %6 = vector.broadcast %4 : vector<1x1x128xf32> to vector<8x2x128xf32>
    %7 = arith.mulf %5, %6 : vector<8x2x128xf32>
    %8 = vector.shape_cast %2 : vector<1x128xf32> to vector<1x1x128xf32>
    %9 = vector.broadcast %8 : vector<1x1x128xf32> to vector<8x2x128xf32>
    %10 = arith.addf %7, %9 : vector<8x2x128xf32>
    %cst = arith.constant 0.000000e+00 : f32
    %11 = vector.broadcast %cst : f32 to vector<2x32xf32>
    %cst_8 = arith.constant 0.000000e+00 : f32
    %12 = vector.broadcast %cst_8 : f32 to vector<2x32xf32>
    %13 = vector.extract_strided_slice %10 {offsets = [0, 0, 0], sizes = [1, 2, 128], strides = [1, 1, 1]} : vector<8x2x128xf32> to vector<1x2x128xf32>
    %14 = vector.shape_cast %13 : vector<1x2x128xf32> to vector<2x128xf32>
    %cst_9 = arith.constant dense<0.000000e+00> : vector<2x128xf32>
    %15 = tpu.matmul %11, %1, %cst_9 {dimension_numbers = #tpu.dot_dimension_numbers<[1], [0], [0], [1], [0, 0, 1, 1], [], []>} : vector<2x32xf32>, vector<32x128xf32>, vector<2x128xf32> -> vector<2x128xf32>
    %16 = arith.addf %14, %15 : vector<2x128xf32>
    %17 = arith.negf %16 : vector<2x128xf32>
    %18 = math.exp %17 : vector<2x128xf32>
    %cst_10 = arith.constant 1.000000e+00 : f32
    %19 = vector.broadcast %cst_10 : f32 to vector<2x128xf32>
    %20 = arith.addf %19, %18 : vector<2x128xf32>
    %21 = arith.divf %19, %20 : vector<2x128xf32>
    %22 = math.tanh %16 : vector<2x128xf32>
    %23 = vector.extract_strided_slice %21 {offsets = [0, 0], sizes = [2, 32], strides = [1, 1]} : vector<2x128xf32> to vector<2x32xf32>
    %24 = vector.extract_strided_slice %21 {offsets = [0, 32], sizes = [2, 32], strides = [1, 1]} : vector<2x128xf32> to vector<2x32xf32>
    %25 = vector.extract_strided_slice %22 {offsets = [0, 64], sizes = [2, 32], strides = [1, 1]} : vector<2x128xf32> to vector<2x32xf32>
    %26 = vector.extract_strided_slice %21 {offsets = [0, 96], sizes = [2, 32], strides = [1, 1]} : vector<2x128xf32> to vector<2x32xf32>
    %27 = arith.mulf %24, %12 : vector<2x32xf32>
    %28 = arith.mulf %23, %25 : vector<2x32xf32>
    %29 = arith.addf %27, %28 : vector<2x32xf32>
    %30 = math.tanh %29 : vector<2x32xf32>
    %31 = arith.mulf %26, %30 : vector<2x32xf32>
    %32 = vector.extract_strided_slice %10 {offsets = [1, 0, 0], sizes = [1, 2, 128], strides = [1, 1, 1]} : vector<8x2x128xf32> to vector<1x2x128xf32>
    %33 = vector.shape_cast %32 : vector<1x2x128xf32> to vector<2x128xf32>
    %cst_11 = arith.constant dense<0.000000e+00> : vector<2x128xf32>
    %34 = tpu.matmul %31, %1, %cst_11 {dimension_numbers = #tpu.dot_dimension_numbers<[1], [0], [0], [1], [0, 0, 1, 1], [], []>} : vector<2x32xf32>, vector<32x128xf32>, vector<2x128xf32> -> vector<2x128xf32>
    %35 = arith.addf %33, %34 : vector<2x128xf32>
    %36 = arith.negf %35 : vector<2x128xf32>
    %37 = math.exp %36 : vector<2x128xf32>
    %cst_12 = arith.constant 1.000000e+00 : f32
    %38 = vector.broadcast %cst_12 : f32 to vector<2x128xf32>
    %39 = arith.addf %38, %37 : vector<2x128xf32>
    %40 = arith.divf %38, %39 : vector<2x128xf32>
    %41 = math.tanh %35 : vector<2x128xf32>
    %42 = vector.extract_strided_slice %40 {offsets = [0, 0], sizes = [2, 32], strides = [1, 1]} : vector<2x128xf32> to vector<2x32xf32>
    %43 = vector.extract_strided_slice %40 {offsets = [0, 32], sizes = [2, 32], strides = [1, 1]} : vector<2x128xf32> to vector<2x32xf32>
    %44 = vector.extract_strided_slice %41 {offsets = [0, 64], sizes = [2, 32], strides = [1, 1]} : vector<2x128xf32> to vector<2x32xf32>
    %45 = vector.extract_strided_slice %40 {offsets = [0, 96], sizes = [2, 32], strides = [1, 1]} : vector<2x128xf32> to vector<2x32xf32>
    %46 = arith.mulf %43, %29 : vector<2x32xf32>
    %47 = arith.mulf %42, %44 : vector<2x32xf32>
    %48 = arith.addf %46, %47 : vector<2x32xf32>
    %49 = math.tanh %48 : vector<2x32xf32>
    %50 = arith.mulf %45, %49 : vector<2x32xf32>
    %51 = vector.extract_strided_slice %10 {offsets = [2, 0, 0], sizes = [1, 2, 128], strides = [1, 1, 1]} : vector<8x2x128xf32> to vector<1x2x128xf32>
    %52 = vector.shape_cast %51 : vector<1x2x128xf32> to vector<2x128xf32>
    %cst_13 = arith.constant dense<0.000000e+00> : vector<2x128xf32>
    %53 = tpu.matmul %50, %1, %cst_13 {dimension_numbers = #tpu.dot_dimension_numbers<[1], [0], [0], [1], [0, 0, 1, 1], [], []>} : vector<2x32xf32>, vector<32x128xf32>, vector<2x128xf32> -> vector<2x128xf32>
    %54 = arith.addf %52, %53 : vector<2x128xf32>
    %55 = arith.negf %54 : vector<2x128xf32>
    %56 = math.exp %55 : vector<2x128xf32>
    %cst_14 = arith.constant 1.000000e+00 : f32
    %57 = vector.broadcast %cst_14 : f32 to vector<2x128xf32>
    %58 = arith.addf %57, %56 : vector<2x128xf32>
    %59 = arith.divf %57, %58 : vector<2x128xf32>
    %60 = math.tanh %54 : vector<2x128xf32>
    %61 = vector.extract_strided_slice %59 {offsets = [0, 0], sizes = [2, 32], strides = [1, 1]} : vector<2x128xf32> to vector<2x32xf32>
    %62 = vector.extract_strided_slice %59 {offsets = [0, 32], sizes = [2, 32], strides = [1, 1]} : vector<2x128xf32> to vector<2x32xf32>
    %63 = vector.extract_strided_slice %60 {offsets = [0, 64], sizes = [2, 32], strides = [1, 1]} : vector<2x128xf32> to vector<2x32xf32>
    %64 = vector.extract_strided_slice %59 {offsets = [0, 96], sizes = [2, 32], strides = [1, 1]} : vector<2x128xf32> to vector<2x32xf32>
    %65 = arith.mulf %62, %48 : vector<2x32xf32>
    %66 = arith.mulf %61, %63 : vector<2x32xf32>
    %67 = arith.addf %65, %66 : vector<2x32xf32>
    %68 = math.tanh %67 : vector<2x32xf32>
    %69 = arith.mulf %64, %68 : vector<2x32xf32>
    %70 = vector.extract_strided_slice %10 {offsets = [3, 0, 0], sizes = [1, 2, 128], strides = [1, 1, 1]} : vector<8x2x128xf32> to vector<1x2x128xf32>
    %71 = vector.shape_cast %70 : vector<1x2x128xf32> to vector<2x128xf32>
    %cst_15 = arith.constant dense<0.000000e+00> : vector<2x128xf32>
    %72 = tpu.matmul %69, %1, %cst_15 {dimension_numbers = #tpu.dot_dimension_numbers<[1], [0], [0], [1], [0, 0, 1, 1], [], []>} : vector<2x32xf32>, vector<32x128xf32>, vector<2x128xf32> -> vector<2x128xf32>
    %73 = arith.addf %71, %72 : vector<2x128xf32>
    %74 = arith.negf %73 : vector<2x128xf32>
    %75 = math.exp %74 : vector<2x128xf32>
    %cst_16 = arith.constant 1.000000e+00 : f32
    %76 = vector.broadcast %cst_16 : f32 to vector<2x128xf32>
    %77 = arith.addf %76, %75 : vector<2x128xf32>
    %78 = arith.divf %76, %77 : vector<2x128xf32>
    %79 = math.tanh %73 : vector<2x128xf32>
    %80 = vector.extract_strided_slice %78 {offsets = [0, 0], sizes = [2, 32], strides = [1, 1]} : vector<2x128xf32> to vector<2x32xf32>
    %81 = vector.extract_strided_slice %78 {offsets = [0, 32], sizes = [2, 32], strides = [1, 1]} : vector<2x128xf32> to vector<2x32xf32>
    %82 = vector.extract_strided_slice %79 {offsets = [0, 64], sizes = [2, 32], strides = [1, 1]} : vector<2x128xf32> to vector<2x32xf32>
    %83 = vector.extract_strided_slice %78 {offsets = [0, 96], sizes = [2, 32], strides = [1, 1]} : vector<2x128xf32> to vector<2x32xf32>
    %84 = arith.mulf %81, %67 : vector<2x32xf32>
    %85 = arith.mulf %80, %82 : vector<2x32xf32>
    %86 = arith.addf %84, %85 : vector<2x32xf32>
    %87 = math.tanh %86 : vector<2x32xf32>
    %88 = arith.mulf %83, %87 : vector<2x32xf32>
    %89 = vector.extract_strided_slice %10 {offsets = [4, 0, 0], sizes = [1, 2, 128], strides = [1, 1, 1]} : vector<8x2x128xf32> to vector<1x2x128xf32>
    %90 = vector.shape_cast %89 : vector<1x2x128xf32> to vector<2x128xf32>
    %cst_17 = arith.constant dense<0.000000e+00> : vector<2x128xf32>
    %91 = tpu.matmul %88, %1, %cst_17 {dimension_numbers = #tpu.dot_dimension_numbers<[1], [0], [0], [1], [0, 0, 1, 1], [], []>} : vector<2x32xf32>, vector<32x128xf32>, vector<2x128xf32> -> vector<2x128xf32>
    %92 = arith.addf %90, %91 : vector<2x128xf32>
    %93 = arith.negf %92 : vector<2x128xf32>
    %94 = math.exp %93 : vector<2x128xf32>
    %cst_18 = arith.constant 1.000000e+00 : f32
    %95 = vector.broadcast %cst_18 : f32 to vector<2x128xf32>
    %96 = arith.addf %95, %94 : vector<2x128xf32>
    %97 = arith.divf %95, %96 : vector<2x128xf32>
    %98 = math.tanh %92 : vector<2x128xf32>
    %99 = vector.extract_strided_slice %97 {offsets = [0, 0], sizes = [2, 32], strides = [1, 1]} : vector<2x128xf32> to vector<2x32xf32>
    %100 = vector.extract_strided_slice %97 {offsets = [0, 32], sizes = [2, 32], strides = [1, 1]} : vector<2x128xf32> to vector<2x32xf32>
    %101 = vector.extract_strided_slice %98 {offsets = [0, 64], sizes = [2, 32], strides = [1, 1]} : vector<2x128xf32> to vector<2x32xf32>
    %102 = vector.extract_strided_slice %97 {offsets = [0, 96], sizes = [2, 32], strides = [1, 1]} : vector<2x128xf32> to vector<2x32xf32>
    %103 = arith.mulf %100, %86 : vector<2x32xf32>
    %104 = arith.mulf %99, %101 : vector<2x32xf32>
    %105 = arith.addf %103, %104 : vector<2x32xf32>
    %106 = math.tanh %105 : vector<2x32xf32>
    %107 = arith.mulf %102, %106 : vector<2x32xf32>
    %108 = vector.extract_strided_slice %10 {offsets = [5, 0, 0], sizes = [1, 2, 128], strides = [1, 1, 1]} : vector<8x2x128xf32> to vector<1x2x128xf32>
    %109 = vector.shape_cast %108 : vector<1x2x128xf32> to vector<2x128xf32>
    %cst_19 = arith.constant dense<0.000000e+00> : vector<2x128xf32>
    %110 = tpu.matmul %107, %1, %cst_19 {dimension_numbers = #tpu.dot_dimension_numbers<[1], [0], [0], [1], [0, 0, 1, 1], [], []>} : vector<2x32xf32>, vector<32x128xf32>, vector<2x128xf32> -> vector<2x128xf32>
    %111 = arith.addf %109, %110 : vector<2x128xf32>
    %112 = arith.negf %111 : vector<2x128xf32>
    %113 = math.exp %112 : vector<2x128xf32>
    %cst_20 = arith.constant 1.000000e+00 : f32
    %114 = vector.broadcast %cst_20 : f32 to vector<2x128xf32>
    %115 = arith.addf %114, %113 : vector<2x128xf32>
    %116 = arith.divf %114, %115 : vector<2x128xf32>
    %117 = math.tanh %111 : vector<2x128xf32>
    %118 = vector.extract_strided_slice %116 {offsets = [0, 0], sizes = [2, 32], strides = [1, 1]} : vector<2x128xf32> to vector<2x32xf32>
    %119 = vector.extract_strided_slice %116 {offsets = [0, 32], sizes = [2, 32], strides = [1, 1]} : vector<2x128xf32> to vector<2x32xf32>
    %120 = vector.extract_strided_slice %117 {offsets = [0, 64], sizes = [2, 32], strides = [1, 1]} : vector<2x128xf32> to vector<2x32xf32>
    %121 = vector.extract_strided_slice %116 {offsets = [0, 96], sizes = [2, 32], strides = [1, 1]} : vector<2x128xf32> to vector<2x32xf32>
    %122 = arith.mulf %119, %105 : vector<2x32xf32>
    %123 = arith.mulf %118, %120 : vector<2x32xf32>
    %124 = arith.addf %122, %123 : vector<2x32xf32>
    %125 = math.tanh %124 : vector<2x32xf32>
    %126 = arith.mulf %121, %125 : vector<2x32xf32>
    %127 = vector.extract_strided_slice %10 {offsets = [6, 0, 0], sizes = [1, 2, 128], strides = [1, 1, 1]} : vector<8x2x128xf32> to vector<1x2x128xf32>
    %128 = vector.shape_cast %127 : vector<1x2x128xf32> to vector<2x128xf32>
    %cst_21 = arith.constant dense<0.000000e+00> : vector<2x128xf32>
    %129 = tpu.matmul %126, %1, %cst_21 {dimension_numbers = #tpu.dot_dimension_numbers<[1], [0], [0], [1], [0, 0, 1, 1], [], []>} : vector<2x32xf32>, vector<32x128xf32>, vector<2x128xf32> -> vector<2x128xf32>
    %130 = arith.addf %128, %129 : vector<2x128xf32>
    %131 = arith.negf %130 : vector<2x128xf32>
    %132 = math.exp %131 : vector<2x128xf32>
    %cst_22 = arith.constant 1.000000e+00 : f32
    %133 = vector.broadcast %cst_22 : f32 to vector<2x128xf32>
    %134 = arith.addf %133, %132 : vector<2x128xf32>
    %135 = arith.divf %133, %134 : vector<2x128xf32>
    %136 = math.tanh %130 : vector<2x128xf32>
    %137 = vector.extract_strided_slice %135 {offsets = [0, 0], sizes = [2, 32], strides = [1, 1]} : vector<2x128xf32> to vector<2x32xf32>
    %138 = vector.extract_strided_slice %135 {offsets = [0, 32], sizes = [2, 32], strides = [1, 1]} : vector<2x128xf32> to vector<2x32xf32>
    %139 = vector.extract_strided_slice %136 {offsets = [0, 64], sizes = [2, 32], strides = [1, 1]} : vector<2x128xf32> to vector<2x32xf32>
    %140 = vector.extract_strided_slice %135 {offsets = [0, 96], sizes = [2, 32], strides = [1, 1]} : vector<2x128xf32> to vector<2x32xf32>
    %141 = arith.mulf %138, %124 : vector<2x32xf32>
    %142 = arith.mulf %137, %139 : vector<2x32xf32>
    %143 = arith.addf %141, %142 : vector<2x32xf32>
    %144 = math.tanh %143 : vector<2x32xf32>
    %145 = arith.mulf %140, %144 : vector<2x32xf32>
    %146 = vector.extract_strided_slice %10 {offsets = [7, 0, 0], sizes = [1, 2, 128], strides = [1, 1, 1]} : vector<8x2x128xf32> to vector<1x2x128xf32>
    %147 = vector.shape_cast %146 : vector<1x2x128xf32> to vector<2x128xf32>
    %cst_23 = arith.constant dense<0.000000e+00> : vector<2x128xf32>
    %148 = tpu.matmul %145, %1, %cst_23 {dimension_numbers = #tpu.dot_dimension_numbers<[1], [0], [0], [1], [0, 0, 1, 1], [], []>} : vector<2x32xf32>, vector<32x128xf32>, vector<2x128xf32> -> vector<2x128xf32>
    %149 = arith.addf %147, %148 : vector<2x128xf32>
    %150 = arith.negf %149 : vector<2x128xf32>
    %151 = math.exp %150 : vector<2x128xf32>
    %cst_24 = arith.constant 1.000000e+00 : f32
    %152 = vector.broadcast %cst_24 : f32 to vector<2x128xf32>
    %153 = arith.addf %152, %151 : vector<2x128xf32>
    %154 = arith.divf %152, %153 : vector<2x128xf32>
    %155 = math.tanh %149 : vector<2x128xf32>
    %156 = vector.extract_strided_slice %154 {offsets = [0, 0], sizes = [2, 32], strides = [1, 1]} : vector<2x128xf32> to vector<2x32xf32>
    %157 = vector.extract_strided_slice %154 {offsets = [0, 32], sizes = [2, 32], strides = [1, 1]} : vector<2x128xf32> to vector<2x32xf32>
    %158 = vector.extract_strided_slice %155 {offsets = [0, 64], sizes = [2, 32], strides = [1, 1]} : vector<2x128xf32> to vector<2x32xf32>
    %159 = vector.extract_strided_slice %154 {offsets = [0, 96], sizes = [2, 32], strides = [1, 1]} : vector<2x128xf32> to vector<2x32xf32>
    %160 = arith.mulf %157, %143 : vector<2x32xf32>
    %161 = arith.mulf %156, %158 : vector<2x32xf32>
    %162 = arith.addf %160, %161 : vector<2x32xf32>
    %163 = math.tanh %162 : vector<2x32xf32>
    %164 = arith.mulf %159, %163 : vector<2x32xf32>
    %cst_25 = arith.constant 0.000000e+00 : f32
    %165 = vector.broadcast %cst_25 : f32 to vector<2x32xf32>
    %166 = arith.maximumf %164, %165 : vector<2x32xf32>
    %c0_26 = arith.constant 0 : index
    %c0_27 = arith.constant 0 : index
    %167 = vector.load %arg5[%c0_26, %c0_27] : memref<1x32xf32, #tpu.memory_space<vmem>>, vector<1x32xf32>
    %168 = vector.broadcast %167 : vector<1x32xf32> to vector<2x32xf32>
    %169 = arith.mulf %166, %168 : vector<2x32xf32>
    %cst_28 = arith.constant dense<0.000000e+00> : vector<2xf32>
    %170 = vector.multi_reduction <add>, %169, %cst_28 [1] : vector<2x32xf32> to vector<2xf32>
    %171 = vector.shape_cast %170 : vector<2xf32> to vector<2x1xf32>
    %c0_29 = arith.constant 0 : index
    %c0_30 = arith.constant 0 : index
    %172 = vector.load %arg6[%c0_29, %c0_30] : memref<1x1xf32, #tpu.memory_space<vmem>>, vector<1x1xf32>
    %173 = vector.broadcast %172 : vector<1x1xf32> to vector<2x1xf32>
    %174 = arith.addf %171, %173 : vector<2x1xf32>
    %c0_31 = arith.constant 0 : index
    %c0_32 = arith.constant 0 : index
    %175 = vector.load %arg7[%c0_31, %c0_32] : memref<2x1xf32, #tpu.memory_space<vmem>>, vector<2x1xf32>
    tpu.vector_store %arg7[%c0_31, %c0_32], %174 {strides = array<i32>} : memref<2x1xf32, #tpu.memory_space<vmem>>, vector<2x1xf32>,
    return
  }
  func.func @transform_0(%arg0: i32) -> (i32, i32, i32) {
    %c0_i32 = arith.constant 0 : i32
    %c0_i32_0 = arith.constant 0 : i32
    %c0_i32_1 = arith.constant 0 : i32
    return %c0_i32, %arg0, %c0_i32_0 : i32, i32, i32
  }
  func.func @transform_1(%arg0: i32) -> (i32, i32) {
    %c0_i32 = arith.constant 0 : i32
    %c0_i32_0 = arith.constant 0 : i32
    %c0_i32_1 = arith.constant 0 : i32
    return %c0_i32, %c0_i32_0 : i32, i32
  }
  func.func @transform_2(%arg0: i32) -> (i32, i32) {
    %c0_i32 = arith.constant 0 : i32
    %c0_i32_0 = arith.constant 0 : i32
    %c0_i32_1 = arith.constant 0 : i32
    return %c0_i32, %c0_i32_0 : i32, i32
  }
  func.func @transform_3(%arg0: i32) -> (i32, i32) {
    %c0_i32 = arith.constant 0 : i32
    %c0_i32_0 = arith.constant 0 : i32
    %c0_i32_1 = arith.constant 0 : i32
    return %c0_i32, %c0_i32_0 : i32, i32
  }
  func.func @transform_4(%arg0: i32) -> (i32, i32) {
    %c0_i32 = arith.constant 0 : i32
    %c0_i32_0 = arith.constant 0 : i32
    %c0_i32_1 = arith.constant 0 : i32
    return %c0_i32, %c0_i32_0 : i32, i32
  }
  func.func @transform_5(%arg0: i32) -> (i32, i32) {
    %c0_i32 = arith.constant 0 : i32
    %c0_i32_0 = arith.constant 0 : i32
    %c0_i32_1 = arith.constant 0 : i32
    return %c0_i32, %c0_i32_0 : i32, i32
  }
  func.func @transform_6(%arg0: i32) -> (i32, i32) {
    %c0_i32 = arith.constant 0 : i32
    %c0_i32_0 = arith.constant 0 : i32
    return %arg0, %c0_i32 : i32, i32
  }
}

</mosaic_0001>

<bundles_post_ra>
// kernel: tpu_custom_call.1
= control target key start
LH: loop header
LB: loop body
LE: loop exit
PB: predicated region body
PF: predicated region fallthrough
CT: control target
= control target key end

     0   :  { %s1432_s0 = inlined_call_operand.vmem [shape: f32[8,2,1], index: 0, kind: input, shape index: {}]   ;;  %s1433_s1 = inlined_call_operand.vmem [shape: f32[1,128], index: 1, kind: input, shape index: {}]   ;;  %s1434_s2 = inlined_call_operand.hbm [shape: f32[32,128], index: 2, kind: input, shape index: {}]   ;;  %s1435_s3 = inlined_call_operand.vmem [shape: f32[1,128], index: 3, kind: input, shape index: {}]   ;;  %s1436_s4 = inlined_call_operand.vmem [shape: f32[1,32], index: 4, kind: input, shape index: {}]   ;;  %s1437_s5 = inlined_call_operand.<no memory space> [shape: f32[1,1], index: 5, kind: input, shape index: {}]   ;;  %s1438_s6 = inlined_call_operand.vmem [shape: f32[2,1], index: 6, kind: output, shape index: {}]  }
   0x1   :  { %v11_v0 = vstv %s1437_s5 }
   0x2   :  { %12 = vst [vmem:[#allocation2] sm:$0x1] %v11_v0 }
   0x3   :  { %13 = vsyncpa [#allocation4], 0  ;;  %s1198_s23 = smov [#allocation3]  }
   0x4   :  { %s23_s24 = sshll.u32 %s1198_s23, 4  ;;  %s24_s24 = int_to_ptr.vmem [resolvable:$true] %s23_s24 }
   0x5   :  { %s1184_s25 = scalar_lea.vmem %s24_s24, 512  ;;  %p1189_p1 = scmp.lt.s32.totalorder %s24_s24, %s24_s24 }
   0x6   :  { %p1185_p0 = scmp.ne.s32.totalorder %s24_s24, %s1184_s25  ;;  %p1190_p2 = scmp.lt.s32.totalorder %s1184_s25, %s1184_s25 }
   0x8   :  { %p1191_p3 = por %p1190_p2, %p1189_p1 }
   0xa   :  { %p1192_p4 = pnand %p1191_p3, %p1185_p0 }
   0xc   :  { %1195 = shalt.err (!%p1192_p4)
}
   0xd   :  { %s1199_s26 = smov 128   ;;  %s1200_s27 = smov 8  }
   0xe   :  { %29 = dma.hbm_to_vmem [thread:$0]  %s1434_s2, 512, %s24_s24, [#allocation4], %s1199_s26, %s1199_s26, %s1200_s27  }
   0xf   :  { %1196 = dma.done.wait [#allocation4], 512  }
  0x10   :  { %1197 = vsyncadd [#allocation4], 4294966784  ;;  %v1201_v1 = vmov 0.0   ;;  %vm1202_vm0 = vmmov 0   ;;  %v1203_v2 = vmov 0   ;;  %v1254_v3 = vld [vmem:[#allocation3 + $0x18] sm:$0xff] }
  0x11   :  { %1013 = vmatprep.subr.mxu0 %v1201_v1  ;;  %1021 = vmatprep.mubr.msk.f32.mxu0 %vm1202_vm0, %v1201_v1  ;;  %v1256_v4 = vld [vmem:[#allocation3 + $0x10] sm:$0xff]  ;;  %v45_v5 = vld [vmem:[%s1432_s0] sm:$0x3]  ;;  %v1264_v6 = vld [vmem:[#allocation3 + $0x8] sm:$0xff]  ;;  %s1204_s10 = smov 64   ;;  %vm121_vm1 = vcmask 261120  }
  0x12   :  { %1110 = vset.pattern.permute.xlu0 %v1203_v2  ;;  %1024 = vmatprep.subr.mxu1 %v1201_v1  ;;  %v1269_v7 = vld [vmem:[#allocation3] sm:$0xff]  ;;  %v1295_v9 = vld [vmem:[%s1433_s1] ss:$0 sm:$0xff]  ;;  %s1205_s1 = smov 32   ;;  %s1206_s25 = smov 96   ;;  %vm935_vm2 = vcmask 254976  }
  0x13   :  { %1032 = vmatprep.mubr.msk.f32.mxu1 %vm1202_vm0, %v1201_v1  ;;  %1111 = vset.pattern.permute.xlu1 %v1203_v2  ;;  %v1301_v11 = vld [vmem:[%s1435_s3] ss:$0 sm:$0xff]  ;;  %v46_v27 = vld [vmem:[%s1432_s0 + $0x2] sm:$0x3]  ;;  %v47_v48 = vld [vmem:[%s1432_s0 + $0x4] sm:$0x3] }
  0x14   :  { %1014 = vmatpush3.msra.mxu0 %v1254_v3  ;;  %1025 = vmatpush3.msra.mxu1 %v1254_v3  ;;  %vm947_vm3 = vcmask 1024  }
  0x15   :  { %1015 = vmatprep.subr.mxu0 %v1201_v1  ;;  %55 = vperm.xlu0 %1110, %v45_v5  }
  0x16   :  { %1016 = vmatpush3.msra.mxu0 %v1256_v4  ;;  %1026 = vmatprep.subr.mxu1 %v1201_v1 }
  0x17   :  { %1017 = vmatprep.subr.mxu0 %v1201_v1  ;;  %1027 = vmatpush3.msra.mxu1 %v1256_v4 }
  0x18   :  { %1018 = vmatpush3.msra.mxu0 %v1264_v6  ;;  %1028 = vmatprep.subr.mxu1 %v1201_v1 }
  0x19   :  { %1019 = vmatprep.subr.mxu0 %v1201_v1  ;;  %1029 = vmatpush3.msra.mxu1 %v1264_v6 }
  0x1a   :  { %1020 = vmatpush3.msra.mxu0 %v1269_v7  ;;  %1030 = vmatprep.subr.mxu1 %v1201_v1 }
  0x1b   :  { %1022 = vmatmul.mubr.f32.vlgmr.msra.gmra.mxu0 %v1201_v1  ;;  %1031 = vmatpush3.msra.mxu1 %v1269_v7 }
  0x1c   :  { %1035 = vmatprep.subr.mxu0 %v1201_v1  ;;  %1043 = vmatprep.mubr.msk.f32.mxu0 %vm1202_vm0, %v1201_v1 }
  0x1d   :  { %1036 = vmatpush3.msra.mxu0 %v1254_v3  ;;  %1046 = vmatprep.subr.mxu1 %v1201_v1 }
  0x1e   :  { %1037 = vmatprep.subr.mxu0 %v1201_v1 }
  0x1f   :  { %1038 = vmatpush3.msra.mxu0 %v1256_v4 }
  0x20   :  { %1039 = vmatprep.subr.mxu0 %v1201_v1 }
  0x21   :  { %1040 = vmatpush3.msra.mxu0 %v1264_v6 }
  0x22   :  { %1041 = vmatprep.subr.mxu0 %v1201_v1 }
  0x23   :  { %1042 = vmatpush3.msra.mxu0 %v1269_v7 }
  0x24   :  { %1057 = vmatprep.subr.mxu0 %v1201_v1 }
  0x90   :  { %v56_v8 = vpop.permute.xlu0 %55 }
  0x91   :  { %v99_v10 = vmul.f32 %v1295_v9, %v56_v8 }
  0x93   :  { %v113_v12 = vadd.f32 %v1301_v11, %v99_v10 }
  0xdb   :  { %v191_v13 = vpop.f32.mrf.mxu0 }
  0xdc   :  { %v195_v14 = vadd.f32 %v191_v13, %v113_v12  ;;  %v48_v12 = vld [vmem:[%s1432_s0 + $0x6] sm:$0x3] }
  0xdd   :  { %v1023_v15 = vpop.f32.mrf.mxu0 }
  0xde   :  { %1112 = vtanh.f32 %v195_v14  ;;  %v956_v17 = vmul.f32 -1.442695, %v195_v14 }
  0xe0   :  { %1114 = vpow2.f32 %v956_v17 }
  0xeb   :  { %v1113_v16 = vpop.eup %1112 }
  0xec   :  { %205 = vrot.lane.b32.xlu0 %v1113_v16, %s1204_s10 }
  0xed   :  { %v1115_v18 = vpop.eup %1114 }
  0xee   :  { %v199_v19 = vadd.f32 1.0, %v1115_v18 }
  0xf0   :  { %1116 = vrcp.f32 %v199_v19 }
  0xfd   :  { %v1117_v20 = vpop.eup %1116 }
  0xfe   :  { %v203_v23 = vmul.f32 0.0, %v1117_v20 }
 0x15e   :  { %v206_v21 = vpop.permute.xlu0 %205 }
 0x15f   :  { %v208_v22 = vmul.f32 %v1117_v20, %v206_v21 }
 0x161   :  { %210 = vrot.lane.b32.xlu1 %v208_v22, %s1205_s1 }
 0x1d3   :  { %v211_v24 = vpop.permute.xlu1 %210 }
 0x1d4   :  { %v213_v25 = vadd.f32 %v211_v24, %v203_v23 }
 0x1d6   :  { %1118 = vtanh.f32 %v213_v25 }
 0x1e3   :  { %v1119_v26 = vpop.eup %1118 }
 0x1e4   :  { %216 = vrot.lane.b32.xlu1 %v1119_v26, %s1204_s10 }
 0x1e8   :  { %60 = vperm.xlu1 %1111, %v46_v27  }
 0x256   :  { %v217_v28 = vpop.permute.xlu1 %216 }
 0x257   :  { %v219_v29 = vmul.f32 %v1117_v20, %v217_v28 }
 0x259   :  { %221 = vrot.lane.b32.xlu0 %v219_v29, %s1205_s1 }
 0x263   :  { %v61_v31 = vpop.permute.xlu1 %60 }
 0x264   :  { %v100_v32 = vmul.f32 %v1295_v9, %v61_v31 }
 0x266   :  { %v114_v33 = vadd.f32 %v1301_v11, %v100_v32 }
 0x2cb   :  { %v222_v30 = vpop.permute.xlu0 %221 }
 0x2cc   :  { %1033 = vmatmul.mubr.msk.f32.vlgmr.msra.gmra.mxu1 %vm121_vm1, %v222_v30 }
 0x2cd   :  { %1047 = vmatpush3.msra.mxu1 %v1254_v3  ;;  %1054 = vmatprep.mubr.msk.f32.mxu1 %vm1202_vm0, %v1201_v1 }
 0x2ce   :  { %1048 = vmatprep.subr.mxu1 %v1201_v1 }
 0x2cf   :  { %1049 = vmatpush3.msra.mxu1 %v1256_v4 }
 0x2d0   :  { %1050 = vmatprep.subr.mxu1 %v1201_v1 }
 0x2d1   :  { %1051 = vmatpush3.msra.mxu1 %v1264_v6 }
 0x2d2   :  { %1052 = vmatprep.subr.mxu1 %v1201_v1 }
 0x2d3   :  { %1053 = vmatpush3.msra.mxu1 %v1269_v7 }
 0x2d4   :  { %1068 = vmatprep.subr.mxu1 %v1201_v1 }
 0x38c   :  { %v291_v34 = vpop.f32.mrf.mxu1 }
 0x38d   :  { %v295_v35 = vadd.f32 %v291_v34, %v114_v33  ;;  %v49_v33 = vld [vmem:[%s1432_s0 + $0x8] sm:$0x3] }
 0x38e   :  { %v1034_v36 = vpop.f32.mrf.mxu1 }
 0x38f   :  { %1120 = vtanh.f32 %v295_v35  ;;  %v958_v38 = vmul.f32 -1.442695, %v295_v35 }
 0x391   :  { %1122 = vpow2.f32 %v958_v38 }
 0x39c   :  { %v1121_v37 = vpop.eup %1120 }
 0x39d   :  { %305 = vrot.lane.b32.xlu0 %v1121_v37, %s1204_s10 }
 0x39e   :  { %v1123_v39 = vpop.eup %1122 }
 0x39f   :  { %v299_v40 = vadd.f32 1.0, %v1123_v39 }
 0x3a1   :  { %1124 = vrcp.f32 %v299_v40 }
 0x3ae   :  { %v1125_v41 = vpop.eup %1124 }
 0x3af   :  { %v303_v44 = vmul.f32 %v1125_v41, %v213_v25 }
 0x40f   :  { %v306_v42 = vpop.permute.xlu0 %305 }
 0x410   :  { %v308_v43 = vmul.f32 %v1125_v41, %v306_v42 }
 0x412   :  { %310 = vrot.lane.b32.xlu1 %v308_v43, %s1205_s1 }
 0x484   :  { %v311_v45 = vpop.permute.xlu1 %310 }
 0x485   :  { %v313_v46 = vadd.f32 %v311_v45, %v303_v44 }
 0x487   :  { %1126 = vtanh.f32 %v313_v46 }
 0x494   :  { %v1127_v47 = vpop.eup %1126 }
 0x495   :  { %316 = vrot.lane.b32.xlu0 %v1127_v47, %s1204_s10 }
 0x499   :  { %65 = vperm.xlu0 %1110, %v47_v48  }
 0x507   :  { %v317_v49 = vpop.permute.xlu0 %316 }
 0x508   :  { %v319_v50 = vmul.f32 %v1125_v41, %v317_v49 }
 0x50a   :  { %321 = vrot.lane.b32.xlu1 %v319_v50, %s1205_s1 }
 0x514   :  { %v66_v52 = vpop.permute.xlu0 %65 }
 0x515   :  { %v101_v53 = vmul.f32 %v1295_v9, %v66_v52 }
 0x517   :  { %v115_v54 = vadd.f32 %v1301_v11, %v101_v53 }
 0x57c   :  { %v322_v51 = vpop.permute.xlu1 %321 }
 0x57d   :  { %1044 = vmatmul.mubr.msk.f32.vlgmr.msra.gmra.mxu0 %vm121_vm1, %v322_v51 }
 0x57e   :  { %1058 = vmatpush3.msra.mxu0 %v1254_v3  ;;  %1065 = vmatprep.mubr.msk.f32.mxu0 %vm1202_vm0, %v1201_v1 }
 0x57f   :  { %1059 = vmatprep.subr.mxu0 %v1201_v1 }
 0x580   :  { %1060 = vmatpush3.msra.mxu0 %v1256_v4 }
 0x581   :  { %1061 = vmatprep.subr.mxu0 %v1201_v1 }
 0x582   :  { %1062 = vmatpush3.msra.mxu0 %v1264_v6 }
 0x583   :  { %1063 = vmatprep.subr.mxu0 %v1201_v1 }
 0x584   :  { %1064 = vmatpush3.msra.mxu0 %v1269_v7 }
 0x585   :  { %1079 = vmatprep.subr.mxu0 %v1201_v1 }
 0x63d   :  { %v391_v55 = vpop.f32.mrf.mxu0 }
 0x63e   :  { %v395_v56 = vadd.f32 %v391_v55, %v115_v54  ;;  %v50_v54 = vld [vmem:[%s1432_s0 + $0xa] sm:$0x3] }
 0x63f   :  { %v1045_v57 = vpop.f32.mrf.mxu0 }
 0x640   :  { %1128 = vtanh.f32 %v395_v56  ;;  %v960_v59 = vmul.f32 -1.442695, %v395_v56 }
 0x642   :  { %1130 = vpow2.f32 %v960_v59 }
 0x64d   :  { %v1129_v58 = vpop.eup %1128 }
 0x64e   :  { %405 = vrot.lane.b32.xlu1 %v1129_v58, %s1204_s10 }
 0x64f   :  { %v1131_v60 = vpop.eup %1130 }
 0x650   :  { %v399_v61 = vadd.f32 1.0, %v1131_v60 }
 0x652   :  { %1132 = vrcp.f32 %v399_v61 }
 0x65f   :  { %v1133_v62 = vpop.eup %1132 }
 0x660   :  { %v403_v2 = vmul.f32 %v1133_v62, %v313_v46 }
 0x6c0   :  { %v406_v63 = vpop.permute.xlu1 %405 }
 0x6c1   :  { %v408_v0 = vmul.f32 %v1133_v62, %v406_v63 }
 0x6c3   :  { %410 = vrot.lane.b32.xlu0 %v408_v0, %s1205_s1 }
 0x735   :  { %v411_v5 = vpop.permute.xlu0 %410 }
 0x736   :  { %v413_v8 = vadd.f32 %v411_v5, %v403_v2 }
 0x738   :  { %1134 = vtanh.f32 %v413_v8 }
 0x745   :  { %v1135_v10 = vpop.eup %1134 }
 0x746   :  { %416 = vrot.lane.b32.xlu1 %v1135_v10, %s1204_s10 }
 0x74a   :  { %70 = vperm.xlu1 %1111, %v48_v12  }
 0x7b8   :  { %v417_v13 = vpop.permute.xlu1 %416 }
 0x7b9   :  { %v419_v14 = vmul.f32 %v1133_v62, %v417_v13  ;;  %v51_v13 = vld [vmem:[%s1432_s0 + $0xc] sm:$0x3] }
 0x7bb   :  { %421 = vrot.lane.b32.xlu0 %v419_v14, %s1205_s1 }
 0x7c5   :  { %v71_v16 = vpop.permute.xlu1 %70 }
 0x7c6   :  { %v102_v17 = vmul.f32 %v1295_v9, %v71_v16 }
 0x7c8   :  { %v116_v18 = vadd.f32 %v1301_v11, %v102_v17 }
 0x82d   :  { %v422_v15 = vpop.permute.xlu0 %421 }
 0x82e   :  { %1055 = vmatmul.mubr.msk.f32.vlgmr.msra.gmra.mxu1 %vm121_vm1, %v422_v15 }
 0x82f   :  { %1069 = vmatpush3.msra.mxu1 %v1254_v3  ;;  %1076 = vmatprep.mubr.msk.f32.mxu1 %vm1202_vm0, %v1201_v1 }
 0x830   :  { %1070 = vmatprep.subr.mxu1 %v1201_v1 }
 0x831   :  { %1071 = vmatpush3.msra.mxu1 %v1256_v4 }
 0x832   :  { %1072 = vmatprep.subr.mxu1 %v1201_v1 }
 0x833   :  { %1073 = vmatpush3.msra.mxu1 %v1264_v6 }
 0x834   :  { %1074 = vmatprep.subr.mxu1 %v1201_v1 }
 0x835   :  { %1075 = vmatpush3.msra.mxu1 %v1269_v7 }
 0x836   :  { %1090 = vmatprep.subr.mxu1 %v1201_v1 }
 0x8ee   :  { %v491_v19 = vpop.f32.mrf.mxu1 }
 0x8ef   :  { %v495_v20 = vadd.f32 %v491_v19, %v116_v18 }
 0x8f0   :  { %v1056_v21 = vpop.f32.mrf.mxu1 }
 0x8f1   :  { %1136 = vtanh.f32 %v495_v20  ;;  %v962_v23 = vmul.f32 -1.442695, %v495_v20 }
 0x8f3   :  { %1138 = vpow2.f32 %v962_v23 }
 0x8fe   :  { %v1137_v22 = vpop.eup %1136 }
 0x8ff   :  { %505 = vrot.lane.b32.xlu0 %v1137_v22, %s1204_s10 }
 0x900   :  { %v1139_v24 = vpop.eup %1138 }
 0x901   :  { %v499_v25 = vadd.f32 1.0, %v1139_v24 }
 0x903   :  { %1140 = vrcp.f32 %v499_v25 }
 0x910   :  { %v1141_v26 = vpop.eup %1140 }
 0x911   :  { %v503_v29 = vmul.f32 %v1141_v26, %v413_v8 }
 0x971   :  { %v506_v27 = vpop.permute.xlu0 %505 }
 0x972   :  { %v508_v28 = vmul.f32 %v1141_v26, %v506_v27 }
 0x974   :  { %510 = vrot.lane.b32.xlu1 %v508_v28, %s1205_s1 }
 0x9e6   :  { %v511_v30 = vpop.permute.xlu1 %510 }
 0x9e7   :  { %v513_v31 = vadd.f32 %v511_v30, %v503_v29 }
 0x9e9   :  { %1142 = vtanh.f32 %v513_v31 }
 0x9f6   :  { %v1143_v32 = vpop.eup %1142 }
 0x9f7   :  { %516 = vrot.lane.b32.xlu0 %v1143_v32, %s1204_s10 }
 0x9fb   :  { %75 = vperm.xlu0 %1110, %v49_v33  }
 0xa69   :  { %v517_v34 = vpop.permute.xlu0 %516 }
 0xa6a   :  { %v519_v35 = vmul.f32 %v1141_v26, %v517_v34  ;;  %v52_v34 = vld [vmem:[%s1432_s0 + $0xe] sm:$0x3] }
 0xa6c   :  { %521 = vrot.lane.b32.xlu1 %v519_v35, %s1205_s1 }
 0xa76   :  { %v76_v37 = vpop.permute.xlu0 %75 }
 0xa77   :  { %v103_v38 = vmul.f32 %v1295_v9, %v76_v37 }
 0xa79   :  { %v117_v39 = vadd.f32 %v1301_v11, %v103_v38 }
 0xade   :  { %v522_v36 = vpop.permute.xlu1 %521 }
 0xadf   :  { %1066 = vmatmul.mubr.msk.f32.vlgmr.msra.gmra.mxu0 %vm121_vm1, %v522_v36 }
 0xae0   :  { %1080 = vmatpush3.msra.mxu0 %v1254_v3  ;;  %1087 = vmatprep.mubr.msk.f32.mxu0 %vm1202_vm0, %v1201_v1 }
 0xae1   :  { %1081 = vmatprep.subr.mxu0 %v1201_v1 }
 0xae2   :  { %1082 = vmatpush3.msra.mxu0 %v1256_v4 }
 0xae3   :  { %1083 = vmatprep.subr.mxu0 %v1201_v1 }
 0xae4   :  { %1084 = vmatpush3.msra.mxu0 %v1264_v6 }
 0xae5   :  { %1085 = vmatprep.subr.mxu0 %v1201_v1 }
 0xae6   :  { %1086 = vmatpush3.msra.mxu0 %v1269_v7 }
 0xb9f   :  { %v591_v40 = vpop.f32.mrf.mxu0 }
 0xba0   :  { %v595_v41 = vadd.f32 %v591_v40, %v117_v39 }
 0xba1   :  { %v1067_v42 = vpop.f32.mrf.mxu0 }
 0xba2   :  { %1144 = vtanh.f32 %v595_v41  ;;  %v964_v44 = vmul.f32 -1.442695, %v595_v41 }
 0xba4   :  { %1146 = vpow2.f32 %v964_v44 }
 0xbaf   :  { %v1145_v43 = vpop.eup %1144 }
 0xbb0   :  { %605 = vrot.lane.b32.xlu1 %v1145_v43, %s1204_s10 }
 0xbb1   :  { %v1147_v45 = vpop.eup %1146 }
 0xbb2   :  { %v599_v46 = vadd.f32 1.0, %v1147_v45 }
 0xbb4   :  { %1148 = vrcp.f32 %v599_v46 }
 0xbc1   :  { %v1149_v47 = vpop.eup %1148 }
 0xbc2   :  { %v603_v50 = vmul.f32 %v1149_v47, %v513_v31 }
 0xc22   :  { %v606_v48 = vpop.permute.xlu1 %605 }
 0xc23   :  { %v608_v49 = vmul.f32 %v1149_v47, %v606_v48 }
 0xc25   :  { %610 = vrot.lane.b32.xlu0 %v608_v49, %s1205_s1 }
 0xc97   :  { %v611_v51 = vpop.permute.xlu0 %610 }
 0xc98   :  { %v613_v52 = vadd.f32 %v611_v51, %v603_v50 }
 0xc9a   :  { %1150 = vtanh.f32 %v613_v52 }
 0xca7   :  { %v1151_v53 = vpop.eup %1150 }
 0xca8   :  { %616 = vrot.lane.b32.xlu1 %v1151_v53, %s1204_s10 }
 0xcac   :  { %80 = vperm.xlu1 %1111, %v50_v54  }
 0xd1a   :  { %v617_v55 = vpop.permute.xlu1 %616 }
 0xd1b   :  { %v619_v56 = vmul.f32 %v1149_v47, %v617_v55 }
 0xd1d   :  { %621 = vrot.lane.b32.xlu0 %v619_v56, %s1205_s1 }
 0xd27   :  { %v81_v58 = vpop.permute.xlu1 %80 }
 0xd28   :  { %v104_v59 = vmul.f32 %v1295_v9, %v81_v58 }
 0xd8f   :  { %v622_v57 = vpop.permute.xlu0 %621 }
 0xd90   :  { %1077 = vmatmul.mubr.msk.f32.vlgmr.msra.gmra.mxu1 %vm121_vm1, %v622_v57 }
 0xd91   :  { %1091 = vmatpush3.msra.mxu1 %v1254_v3  ;;  %1098 = vmatprep.mubr.msk.f32.mxu1 %vm1202_vm0, %v1201_v1  ;;  %v118_v3 = vadd.f32 %v1301_v11, %v104_v59 }
 0xd92   :  { %1092 = vmatprep.subr.mxu1 %v1201_v1 }
 0xd93   :  { %1093 = vmatpush3.msra.mxu1 %v1256_v4 }
 0xd94   :  { %1094 = vmatprep.subr.mxu1 %v1201_v1 }
 0xd95   :  { %1095 = vmatpush3.msra.mxu1 %v1264_v6 }
 0xd96   :  { %1096 = vmatprep.subr.mxu1 %v1201_v1 }
 0xd97   :  { %1097 = vmatpush3.msra.mxu1 %v1269_v7 }
 0xe50   :  { %v691_v60 = vpop.f32.mrf.mxu1 }
 0xe51   :  { %v695_v61 = vadd.f32 %v691_v60, %v118_v3  ;;  %v972_v60 = vld [vmem:[#allocation2] ss:$0 sm:$0xff] }
 0xe52   :  { %v1078_v62 = vpop.f32.mrf.mxu1 }
 0xe53   :  { %1152 = vtanh.f32 %v695_v61  ;;  %v966_v4 = vmul.f32 -1.442695, %v695_v61 }
 0xe55   :  { %1154 = vpow2.f32 %v966_v4 }
 0xe60   :  { %v1153_v63 = vpop.eup %1152 }
 0xe61   :  { %705 = vrot.lane.b32.xlu0 %v1153_v63, %s1204_s10 }
 0xe62   :  { %v1155_v0 = vpop.eup %1154 }
 0xe63   :  { %v699_v6 = vadd.f32 1.0, %v1155_v0 }
 0xe65   :  { %1156 = vrcp.f32 %v699_v6 }
 0xe72   :  { %v1157_v1 = vpop.eup %1156 }
 0xe73   :  { %v703_v5 = vmul.f32 %v1157_v1, %v613_v52 }
 0xed3   :  { %v706_v2 = vpop.permute.xlu0 %705 }
 0xed4   :  { %v708_v7 = vmul.f32 %v1157_v1, %v706_v2 }
 0xed6   :  { %710 = vrot.lane.b32.xlu1 %v708_v7, %s1205_s1 }
 0xf48   :  { %v711_v8 = vpop.permute.xlu1 %710 }
 0xf49   :  { %v713_v10 = vadd.f32 %v711_v8, %v703_v5 }
 0xf4b   :  { %1158 = vtanh.f32 %v713_v10 }
 0xf58   :  { %v1159_v12 = vpop.eup %1158 }
 0xf59   :  { %716 = vrot.lane.b32.xlu0 %v1159_v12, %s1204_s10 }
 0xf5d   :  { %85 = vperm.xlu0 %1110, %v51_v13  }
 0xfcb   :  { %v717_v14 = vpop.permute.xlu0 %716 }
 0xfcc   :  { %v719_v15 = vmul.f32 %v1157_v1, %v717_v14 }
 0xfce   :  { %721 = vrot.lane.b32.xlu1 %v719_v15, %s1205_s1 }
 0xfd8   :  { %v86_v17 = vpop.permute.xlu0 %85 }
 0xfd9   :  { %v105_v18 = vmul.f32 %v1295_v9, %v86_v17 }
 0xfdb   :  { %v119_v19 = vadd.f32 %v1301_v11, %v105_v18 }
0x1040   :  { %v722_v16 = vpop.permute.xlu1 %721 }
0x1041   :  { %1088 = vmatmul.mubr.msk.f32.vlgmr.msra.gmra.mxu0 %vm121_vm1, %v722_v16 }
0x1101   :  { %v791_v20 = vpop.f32.mrf.mxu0 }
0x1102   :  { %v795_v21 = vadd.f32 %v791_v20, %v119_v19 }
0x1103   :  { %v1089_v22 = vpop.f32.mrf.mxu0 }
0x1104   :  { %1160 = vtanh.f32 %v795_v21  ;;  %v968_v24 = vmul.f32 -1.442695, %v795_v21 }
0x1106   :  { %1162 = vpow2.f32 %v968_v24 }
0x1111   :  { %v1161_v23 = vpop.eup %1160 }
0x1112   :  { %805 = vrot.lane.b32.xlu1 %v1161_v23, %s1204_s10 }
0x1113   :  { %v1163_v25 = vpop.eup %1162 }
0x1114   :  { %v799_v26 = vadd.f32 1.0, %v1163_v25 }
0x1116   :  { %1164 = vrcp.f32 %v799_v26 }
0x1123   :  { %v1165_v27 = vpop.eup %1164 }
0x1124   :  { %v803_v30 = vmul.f32 %v1165_v27, %v713_v10 }
0x1184   :  { %v806_v28 = vpop.permute.xlu1 %805 }
0x1185   :  { %v808_v29 = vmul.f32 %v1165_v27, %v806_v28 }
0x1187   :  { %810 = vrot.lane.b32.xlu0 %v808_v29, %s1205_s1 }
0x11f9   :  { %v811_v31 = vpop.permute.xlu0 %810 }
0x11fa   :  { %v813_v32 = vadd.f32 %v811_v31, %v803_v30 }
0x11fc   :  { %1166 = vtanh.f32 %v813_v32 }
0x1209   :  { %v1167_v33 = vpop.eup %1166 }
0x120a   :  { %816 = vrot.lane.b32.xlu1 %v1167_v33, %s1204_s10 }
0x120e   :  { %90 = vperm.xlu1 %1111, %v52_v34  }
0x127c   :  { %v817_v35 = vpop.permute.xlu1 %816 }
0x127d   :  { %v819_v36 = vmul.f32 %v1165_v27, %v817_v35 }
0x127f   :  { %821 = vrot.lane.b32.xlu0 %v819_v36, %s1205_s1 }
0x1289   :  { %v91_v38 = vpop.permute.xlu1 %90 }
0x128a   :  { %v106_v39 = vmul.f32 %v1295_v9, %v91_v38  ;;  %v971_v9 = vld [vmem:[%s1436_s4] ss:$0 sm:$0xff] }
0x128c   :  { %v120_v40 = vadd.f32 %v1301_v11, %v106_v39 }
0x12f1   :  { %v822_v37 = vpop.permute.xlu0 %821 }
0x12f2   :  { %1099 = vmatmul.mubr.msk.f32.vlgmr.msra.gmra.mxu1 %vm121_vm1, %v822_v37 }
0x13b2   :  { %v891_v41 = vpop.f32.mrf.mxu1 }
0x13b3   :  { %v895_v42 = vadd.f32 %v891_v41, %v120_v40 }
0x13b4   :  { %v1100_v43 = vpop.f32.mrf.mxu1 }
0x13b5   :  { %1168 = vtanh.f32 %v895_v42  ;;  %v970_v45 = vmul.f32 -1.442695, %v895_v42 }
0x13b7   :  { %1170 = vpow2.f32 %v970_v45 }
0x13c2   :  { %v1169_v44 = vpop.eup %1168 }
0x13c3   :  { %905 = vrot.lane.b32.xlu0 %v1169_v44, %s1204_s10 }
0x13c4   :  { %v1171_v46 = vpop.eup %1170 }
0x13c5   :  { %v899_v47 = vadd.f32 1.0, %v1171_v46 }
0x13c7   :  { %1172 = vrcp.f32 %v899_v47 }
0x13d4   :  { %v1173_v48 = vpop.eup %1172 }
0x13d5   :  { %v903_v11 = vmul.f32 %v1173_v48, %v813_v32 }
0x1435   :  { %v906_v49 = vpop.permute.xlu0 %905 }
0x1436   :  { %v908_v50 = vmul.f32 %v1173_v48, %v906_v49 }
0x1438   :  { %910 = vrot.lane.b32.xlu1 %v908_v50, %s1205_s1 }
0x143c   :  { %927 = vrot.lane.b32.xlu1 %v971_v9, %s1206_s25 }
0x14aa   :  { %v911_v51 = vpop.permute.xlu1 %910 }
0x14ab   :  { %v913_v52 = vadd.f32 %v911_v51, %v903_v11 }
0x14ad   :  { %1174 = vtanh.f32 %v913_v52 }
0x14ae   :  { %v928_v56 = vpop.permute.xlu1 %927 }
0x14ba   :  { %v1175_v53 = vpop.eup %1174 }
0x14bb   :  { %916 = vrot.lane.b32.xlu0 %v1175_v53, %s1204_s10 }
0x152d   :  { %v917_v54 = vpop.permute.xlu0 %916 }
0x152e   :  { %v919_v55 = vmul.f32 %v1173_v48, %v917_v54 }
0x1530   :  { %v920_v57 = vmax.f32 %v919_v55, 0.0 }
0x1532   :  { %v930_v58 = vmul.f32 %v928_v56, %v920_v57 }
0x1534   :  { %932 = vrot.lane.b32.xlu0 %v930_v58, %s1205_s1 }
0x15a6   :  { %v933_v59 = vpop.permute.xlu0 %932 }
0x15a7   :  { %v936_v3 = vsel %vm935_vm2, %v933_v59, 0.0 }
0x15a8   :  { %937 = vadd.xlane.f32.xlu1 %v936_v3 }
0x1631   :  { %v938_v61 = vpop.xlane.xlu1 %937 }
0x1632   :  { %v946_v62 = vadd.f32 %v972_v60, %v938_v61 }
0x1634   :  { %948 = vst.msk [vmem:[%s1438_s6] sm:$0x3] %vm947_vm3, %v946_v62 }
0x1635   :  { %953 = vsyncpa [#allocation4], 1 }

</bundles_post_ra>
